<compile_context>
chip_gen: v6e
topology: v6e:2x2x1
jax: 0.10.0
libtpu: 0.0.40
codegen_flags: <defaults>
</compile_context>

<pallas_src>
import jax
import jax.numpy as jnp
from jax.experimental import pallas as pl
from jax.experimental.pallas import tpu as pltpu


def _round_up(n, m):
    return ((n + m - 1) // m) * m


def _make_fnn_kernel(num_layers, out_dims):
    """Build the fused MLP kernel.

    Kernel ref order:
      x_ref, w0_ref, ..., w{L-1}_ref, bias_pack_ref, out_ref
    ReLU is applied after every layer except the last one (matching the
    PyTorch Sequential: Linear,ReLU, [Linear,ReLU]*depth, Linear).
    """

    def kernel(x_ref, *refs):
        out_ref = refs[-1]
        bias_ref = refs[-2]                        # (num_layers, max_width)
        h = x_ref[...].astype(jnp.float32)
        for i in range(num_layers):
            w = refs[i][...]
            b = bias_ref[i:i + 1, :out_dims[i]]    # (1, out_dim), static slice
            h = jnp.dot(h, w, preferred_element_type=jnp.float32) + b
            if i < num_layers - 1:
                h = jnp.maximum(h, 0.0)            # nn.ReLU()
        out_ref[...] = h.astype(out_ref.dtype)

    return kernel


def fnn_forward(x, weights, biases, b_extra, *, block_batch=512):
    """Run the fused MLP kernel.

    x:        (B, num_input) float32
    weights:  list of (in, out) float32 arrays (already transposed vs PyTorch)
    biases:   list of (out,)    float32 arrays
    b_extra:  (num_output,)     float32 array (the module's self.b)
    """
    B, num_input = x.shape
    num_layers = len(weights)
    num_output = weights[-1].shape[1]

    weights = list(weights)
    biases = list(biases)

    # (1) Fold b_extra into the last layer's bias: drops an operand + an add.
    biases[-1] = biases[-1] + b_extra

    # (2) Lane-dense output: zero-pad the final feature dim to a multiple of 128.
    out_padded = _round_up(num_output, 128)
    weights[-1] = jnp.pad(weights[-1], ((0, 0), (0, out_padded - num_output)))
    biases[-1] = jnp.pad(biases[-1], (0, out_padded - num_output))

    out_dims = [w.shape[1] for w in weights]       # last entry == out_padded

    # (3) Pack all per-layer biases into one (L, max_width) VMEM operand.
    max_w = max(out_dims)
    bias_pack = jnp.stack(
        [jnp.pad(b, (0, max_w - b.shape[0])) for b in biases])

    # (4) Batch grid: tile the batch dim, keep weights resident across steps.
    #     A large-ish tile amortizes the ~0.35us per-step overhead; weights +
    #     activations here are tiny, so VMEM is never the limiter.
    tm = _round_up(min(block_batch, _round_up(B, 8)), 8)
    B_pad = _round_up(B, tm)
    if B_pad != B:
        x = jnp.pad(x, ((0, B_pad - B), (0, 0)))
    grid = (B_pad // tm,)

    kernel = _make_fnn_kernel(num_layers, out_dims)

    in_arrays = [x]
    in_specs = [pl.BlockSpec((tm, num_input), lambda i: (i, 0))]
    for w in weights:
        in_arrays.append(w)
        # Same block index every step -> weight stays VMEM-resident (no re-DMA).
        in_specs.append(pl.BlockSpec(w.shape, lambda i: (0, 0)))
    in_arrays.append(bias_pack)
    in_specs.append(pl.BlockSpec(bias_pack.shape, lambda i: (0, 0)))

    out_shape = jax.ShapeDtypeStruct((B_pad, out_padded), jnp.float32)
    out_spec = pl.BlockSpec((tm, out_padded), lambda i: (i, 0))

    out = pl.pallas_call(
        kernel,
        out_shape=out_shape,
        grid=grid,
        in_specs=in_specs,
        out_specs=out_spec,
        compiler_params=pltpu.CompilerParams(
            dimension_semantics=("parallel",)),
    )(*in_arrays)

    # Slice away batch/feature padding.
    return out[:B, :num_output]


def init_fnn_params(key, num_input, num_output, depth, width):
    """Deterministic parameter init matching the FNN module's shapes.

    Linear weights use Xavier-uniform (as in _initialize_weights); Linear
    biases use PyTorch's default U(-1/sqrt(fan_in), 1/sqrt(fan_in)); the extra
    bias self.b is zeros.  Weights are returned pre-transposed to (in, out).
    """
    layer_dims = [(num_input, width)]
    for _ in range(depth):
        layer_dims.append((width, width))
    layer_dims.append((width, num_output))

    weights, biases = [], []
    for (fan_in, fan_out) in layer_dims:
        key, kw, kb = jax.random.split(key, 3)
        limit = jnp.sqrt(6.0 / (fan_in + fan_out))            # xavier_uniform_
        w = jax.random.uniform(kw, (fan_in, fan_out), jnp.float32,
                               minval=-limit, maxval=limit)
        b_bound = 1.0 / jnp.sqrt(fan_in)
        b = jax.random.uniform(kb, (fan_out,), jnp.float32,
                               minval=-b_bound, maxval=b_bound)
        weights.append(w)
        biases.append(b)

    b_extra = jnp.zeros((num_output,), jnp.float32)            # self.b
    return weights, biases, b_extra


def fnn_reference(x, weights, biases, b_extra):
    """Pure-JAX reference for correctness checking."""
    h = x
    n = len(weights)
    for i, (w, b) in enumerate(zip(weights, biases)):
        h = h @ w + b
        if i < n - 1:
            h = jnp.maximum(h, 0.0)
    return h + b_extra


if __name__ == "__main__":
    # Small shapes consistent with the module (Lotka-Volterra-like inputs).
    batch = 64
    num_input = 4
    num_output = 3
    depth = 2
    width = 32

    key = jax.random.PRNGKey(0)
    key, kx = jax.random.split(key)
    x = jax.random.normal(kx, (batch, num_input), jnp.float32)

    weights, biases, b_extra = init_fnn_params(
        key, num_input, num_output, depth, width)

    # block_batch=16 -> a 4-step batch grid, exercising the pipelined path
    # (tiny shapes; production calls use the default larger tile).
    out = fnn_forward(x, weights, biases, b_extra, block_batch=16)
    out = jax.block_until_ready(out)

    ref = fnn_reference(x, weights, biases, b_extra)
    assert out.shape == (batch, num_output)
    assert jnp.allclose(out, ref, atol=1e-5, rtol=1e-5), "mismatch vs reference"

    # Also exercise the single-step (whole batch in one tile) path.
    out2 = jax.block_until_ready(fnn_forward(x, weights, biases, b_extra))
    assert jnp.allclose(out2, ref, atol=1e-5, rtol=1e-5), "mismatch vs reference"

    print("KERNEL_OK")
</pallas_src>

<mosaic_0001>
module attributes {stable_mosaic.version = 11 : i64} {
  func.func @kernel(%arg0: i32, %arg1: memref<16x4xf32, #tpu.memory_space<vmem>>, %arg2: memref<4x32xf32, #tpu.memory_space<vmem>>, %arg3: memref<32x32xf32, #tpu.memory_space<vmem>>, %arg4: memref<32x32xf32, #tpu.memory_space<vmem>>, %arg5: memref<32x128xf32, #tpu.memory_space<vmem>>, %arg6: memref<4x128xf32, #tpu.memory_space<vmem>>, %arg7: memref<16x128xf32, #tpu.memory_space<vmem>>) attributes {dimension_semantics = [#tpu.dimension_semantics<parallel>], iteration_bounds = array<i64: 4>, scalar_prefetch = 0 : i64, scratch_operands = 0 : i64, tpu.core_type = #tpu.core_type<tc>, window_params = [{transform_indices = @transform_0, window_bounds = array<i64: 16, 4>}, {pipeline_mode = #tpu.pipeline_mode<synchronous>, transform_indices = @transform_1, window_bounds = array<i64: 4, 32>}, {pipeline_mode = #tpu.pipeline_mode<synchronous>, transform_indices = @transform_2, window_bounds = array<i64: 32, 32>}, {pipeline_mode = #tpu.pipeline_mode<synchronous>, transform_indices = @transform_3, window_bounds = array<i64: 32, 32>}, {pipeline_mode = #tpu.pipeline_mode<synchronous>, transform_indices = @transform_4, window_bounds = array<i64: 32, 128>}, {pipeline_mode = #tpu.pipeline_mode<synchronous>, transform_indices = @transform_5, window_bounds = array<i64: 4, 128>}, {transform_indices = @transform_6, window_bounds = array<i64: 16, 128>}]} {
    %c0 = arith.constant 0 : index
    %c0_0 = arith.constant 0 : index
    %0 = vector.load %arg1[%c0, %c0_0] : memref<16x4xf32, #tpu.memory_space<vmem>>, vector<16x4xf32>
    %c0_1 = arith.constant 0 : index
    %c0_2 = arith.constant 0 : index
    %1 = vector.load %arg2[%c0_1, %c0_2] : memref<4x32xf32, #tpu.memory_space<vmem>>, vector<4x32xf32>
    %c0_3 = arith.constant 0 : index
    %c0_4 = arith.constant 0 : index
    %2 = vector.load %arg6[%c0_3, %c0_4] : memref<4x128xf32, #tpu.memory_space<vmem>>, vector<1x32xf32>
    %cst = arith.constant dense<0.000000e+00> : vector<16x32xf32>
    %3 = tpu.matmul %0, %1, %cst {dimension_numbers = #tpu.dot_dimension_numbers<[1], [0], [0], [1], [0, 0, 1, 1], [], []>} : vector<16x4xf32>, vector<4x32xf32>, vector<16x32xf32> -> vector<16x32xf32>
    %4 = vector.broadcast %2 : vector<1x32xf32> to vector<16x32xf32>
    %5 = arith.addf %3, %4 : vector<16x32xf32>
    %cst_5 = arith.constant 0.000000e+00 : f32
    %6 = vector.broadcast %cst_5 : f32 to vector<16x32xf32>
    %7 = arith.maximumf %5, %6 : vector<16x32xf32>
    %c0_6 = arith.constant 0 : index
    %c0_7 = arith.constant 0 : index
    %8 = vector.load %arg3[%c0_6, %c0_7] : memref<32x32xf32, #tpu.memory_space<vmem>>, vector<32x32xf32>
    %c1 = arith.constant 1 : index
    %c0_8 = arith.constant 0 : index
    %9 = vector.load %arg6[%c1, %c0_8] : memref<4x128xf32, #tpu.memory_space<vmem>>, vector<1x32xf32>
    %cst_9 = arith.constant dense<0.000000e+00> : vector<16x32xf32>
    %10 = tpu.matmul %7, %8, %cst_9 {dimension_numbers = #tpu.dot_dimension_numbers<[1], [0], [0], [1], [0, 0, 1, 1], [], []>} : vector<16x32xf32>, vector<32x32xf32>, vector<16x32xf32> -> vector<16x32xf32>
    %11 = vector.broadcast %9 : vector<1x32xf32> to vector<16x32xf32>
    %12 = arith.addf %10, %11 : vector<16x32xf32>
    %cst_10 = arith.constant 0.000000e+00 : f32
    %13 = vector.broadcast %cst_10 : f32 to vector<16x32xf32>
    %14 = arith.maximumf %12, %13 : vector<16x32xf32>
    %c0_11 = arith.constant 0 : index
    %c0_12 = arith.constant 0 : index
    %15 = vector.load %arg4[%c0_11, %c0_12] : memref<32x32xf32, #tpu.memory_space<vmem>>, vector<32x32xf32>
    %c2 = arith.constant 2 : index
    %c0_13 = arith.constant 0 : index
    %16 = vector.load %arg6[%c2, %c0_13] : memref<4x128xf32, #tpu.memory_space<vmem>>, vector<1x32xf32>
    %cst_14 = arith.constant dense<0.000000e+00> : vector<16x32xf32>
    %17 = tpu.matmul %14, %15, %cst_14 {dimension_numbers = #tpu.dot_dimension_numbers<[1], [0], [0], [1], [0, 0, 1, 1], [], []>} : vector<16x32xf32>, vector<32x32xf32>, vector<16x32xf32> -> vector<16x32xf32>
    %18 = vector.broadcast %16 : vector<1x32xf32> to vector<16x32xf32>
    %19 = arith.addf %17, %18 : vector<16x32xf32>
    %cst_15 = arith.constant 0.000000e+00 : f32
    %20 = vector.broadcast %cst_15 : f32 to vector<16x32xf32>
    %21 = arith.maximumf %19, %20 : vector<16x32xf32>
    %c0_16 = arith.constant 0 : index
    %c0_17 = arith.constant 0 : index
    %22 = vector.load %arg5[%c0_16, %c0_17] : memref<32x128xf32, #tpu.memory_space<vmem>>, vector<32x128xf32>
    %c3 = arith.constant 3 : index
    %c0_18 = arith.constant 0 : index
    %23 = vector.load %arg6[%c3, %c0_18] : memref<4x128xf32, #tpu.memory_space<vmem>>, vector<1x128xf32>
    %cst_19 = arith.constant dense<0.000000e+00> : vector<16x128xf32>
    %24 = tpu.matmul %21, %22, %cst_19 {dimension_numbers = #tpu.dot_dimension_numbers<[1], [0], [0], [1], [0, 0, 1, 1], [], []>} : vector<16x32xf32>, vector<32x128xf32>, vector<16x128xf32> -> vector<16x128xf32>
    %25 = vector.broadcast %23 : vector<1x128xf32> to vector<16x128xf32>
    %26 = arith.addf %24, %25 : vector<16x128xf32>
    %c0_20 = arith.constant 0 : index
    %c0_21 = arith.constant 0 : index
    %27 = vector.load %arg7[%c0_20, %c0_21] : memref<16x128xf32, #tpu.memory_space<vmem>>, vector<16x128xf32>
    tpu.vector_store %arg7[%c0_20, %c0_21], %26 {strides = array<i32>} : memref<16x128xf32, #tpu.memory_space<vmem>>, vector<16x128xf32>,
    return
  }
  func.func @transform_0(%arg0: i32) -> (i32, i32) {
    %c0_i32 = arith.constant 0 : i32
    %c0_i32_0 = arith.constant 0 : i32
    return %arg0, %c0_i32 : i32, i32
  }
  func.func @transform_1(%arg0: i32) -> (i32, i32) {
    %c0_i32 = arith.constant 0 : i32
    %c0_i32_0 = arith.constant 0 : i32
    %c0_i32_1 = arith.constant 0 : i32
    return %c0_i32, %c0_i32_0 : i32, i32
  }
  func.func @transform_2(%arg0: i32) -> (i32, i32) {
    %c0_i32 = arith.constant 0 : i32
    %c0_i32_0 = arith.constant 0 : i32
    %c0_i32_1 = arith.constant 0 : i32
    return %c0_i32, %c0_i32_0 : i32, i32
  }
  func.func @transform_3(%arg0: i32) -> (i32, i32) {
    %c0_i32 = arith.constant 0 : i32
    %c0_i32_0 = arith.constant 0 : i32
    %c0_i32_1 = arith.constant 0 : i32
    return %c0_i32, %c0_i32_0 : i32, i32
  }
  func.func @transform_4(%arg0: i32) -> (i32, i32) {
    %c0_i32 = arith.constant 0 : i32
    %c0_i32_0 = arith.constant 0 : i32
    %c0_i32_1 = arith.constant 0 : i32
    return %c0_i32, %c0_i32_0 : i32, i32
  }
  func.func @transform_5(%arg0: i32) -> (i32, i32) {
    %c0_i32 = arith.constant 0 : i32
    %c0_i32_0 = arith.constant 0 : i32
    %c0_i32_1 = arith.constant 0 : i32
    return %c0_i32, %c0_i32_0 : i32, i32
  }
  func.func @transform_6(%arg0: i32) -> (i32, i32) {
    %c0_i32 = arith.constant 0 : i32
    %c0_i32_0 = arith.constant 0 : i32
    return %arg0, %c0_i32 : i32, i32
  }
}

</mosaic_0001>

<bundles_post_ra>
// kernel: tpu_custom_call.1
= control target key start
LH: loop header
LB: loop body
LE: loop exit
PB: predicated region body
PF: predicated region fallthrough
CT: control target
= control target key end

     0   :  { %11 = vsyncpa [#allocation3], 0  ;;  %s1167_s0 = inlined_call_operand.vmem [shape: f32[64,4], index: 0, kind: input, shape index: {}]   ;;  %s1168_s1 = inlined_call_operand.vmem [shape: f32[4,32], index: 1, kind: input, shape index: {}]   ;;  %s1169_s2 = inlined_call_operand.vmem [shape: f32[32,32], index: 2, kind: input, shape index: {}]   ;;  %s1170_s3 = inlined_call_operand.vmem [shape: f32[32,32], index: 3, kind: input, shape index: {}]   ;;  %s1171_s4 = inlined_call_operand.hbm [shape: f32[32,128], index: 4, kind: input, shape index: {}]   ;;  %s1172_s5 = inlined_call_operand.vmem [shape: f32[4,128], index: 5, kind: input, shape index: {}]   ;;  %s1173_s6 = inlined_call_operand.hbm [shape: f32[64,128], index: 6, kind: output, shape index: {}]  }
   0x1   :  { %12 = vsyncpa [#allocation4], 0 }
   0x2   :  { %14 = vsyncpa [#allocation4 + $0x1], 0  ;;  %s1003_s21 = smov 0   ;;  %s1005_s22 = smov 0  }
   0x3   :  { %s1007_s23 = smov 0   ;;  %s1009_s24 = smov 0  }
   0x4 LB: > { %s1024_s25 = sadd.s32 4294967295, %s960_s24   ;;  %s729_s26 = sadd.s32 4294967294, %s960_s24   ;;  %s960_s24 = sphi %s1009_s24, %s1181_s24   ;;  %s956_s23 = sphi %s1007_s23, %s1180_s23   ;;  %s952_s22 = sphi %s1005_s22, %s1179_s22   ;;  %s948_s21 = sphi %s1003_s21, %s1178_s21  }
   0x5   : > { %s1028_s27 = sadd.s32 1, %s960_s24   ;;  %s158_s28 = sadd.s32 1, %s956_s23 }
   0x6   : > { %s155_s29 = ssub.s32 %s960_s24, %s1028_s27  ;;  %p168_p0 = scmp.ne.s32.totalorder %s956_s23, %s952_s22 }
   0x7   : > { %p156_p1 = scmp.eq.s32.totalorder %s155_s29, 0  ;;  %p169_p2 = scmp.eq.s32.totalorder %s1024_s25, 3 }
   0x8   : > { %p174_p3 = scmp.ne.s32.totalorder %s952_s22, %s948_s21  ;;  %p175_p4 = scmp.eq.s32.totalorder %s729_s26, 3 }
   0x9   : > { %s1039_s30 = scalar_select %p156_p1, %s956_s23, %s158_s28  }
   0xa   : > { %p1041_p5 = por %p169_p2, %p168_p0  ;;  %p1045_p6 = por %p175_p4, %p174_p3 }
   0xb   : > { %p730_p7 = scmp.ge.s32.totalorder %s960_s24, 1  ;;  %p182_p8 = scmp.lt.s32.totalorder %s960_s24, 5 }
   0xc   : > { %s1175_s8 = scalar_select %p1045_p6, 1, 0 }
   0xd   : > { %p830_p9 = scmp.eq.s32.totalorder %s1024_s25, 0  ;;  %p1052_p10 = pnand %p730_p7, %p182_p8 }
   0xe   : > { %s962_s10 = smov [#allocation2]  }
   0xf   : > { %s203_s11 = sshll.u32 %s962_s10, 4  ;;  %p822_p11 = pneg %p1052_p10  ;;  %s204_s11 = int_to_ptr.vmem [resolvable:$true] %s203_s11 }
  0x10   : > { %s881_s12 = scalar_lea.vmem %s204_s11, 512  ;;  %p889_p3 = scmp.lt.s32.totalorder %s204_s11, %s204_s11 }
  0x11   : > { %p823_p12 = pnand %p830_p9, %p822_p11  ;;  %p882_p0 = scmp.ne.s32.totalorder %s204_s11, %s881_s12 }
  0x12   : > { %p890_p4 = scmp.lt.s32.totalorder %s881_s12, %s881_s12 }
  0x13   : > { %p872_p13 = pneg %p823_p12 }
  0x14   : > { %p891_p6 = por %p890_p4, %p889_p3 }
  0x15   : > { %p884_p1 = pnand %p882_p0, %p872_p13 }
  0x17   : > { %p885_p2 = pneg %p884_p1 }
  0x19   : > { %p892_p7 = pnand %p891_p6, %p885_p2 }
  0x1b   : > { %895 = shalt.err (!%p892_p7)
}
  0x1c   : > { %s963_s13 = smov 128   ;;  %s964_s14 = smov 8  }
  0x1d   : > { %825 = dma.hbm_to_vmem [thread:$0]  (!%p823_p12), %s1171_s4, 512, %s204_s11, [#allocation3], %s963_s13, %s963_s13, %s964_s14  }
  0x1e   : > { %231 = sbr.rel (%p1052_p10) target bundleno = 855 (0x357), region = 44 }
  0x23   : > { %939 = dma.done.wait (%p830_p9), [#allocation3], 512  }
  0x24   : > { %941 = vsyncadd (%p830_p9), [#allocation3], 4294966784  ;;  %s736_s17 = sshll.u32 %s1024_s25, 1  ;;  %vm283_vm0 = vcmask 1043456   ;;  %vm276_vm1 = vcmask 31744   ;;  %v367_v3 = vld [vmem:[%s1169_s2 + $0x18] sm:$0xff] }
  0x25   : > { %p262_p8 = scmp.lt.s32.totalorder %s736_s17, 7  ;;  %v270_v0 = vld [vmem:[%s1168_s1] sm:$0xf]  ;;  %783 = vmatprep.subr.mxu1 %v367_v3  ;;  %v366_v4 = vld [vmem:[%s1169_s2 + $0x10] sm:$0xff]  ;;  %v365_v5 = vld [vmem:[%s1169_s2 + $0x8] sm:$0xff]  ;;  %vm373_vm2 = vcmask 261120  }
  0x26   : > { %778 = vmatprep.subr.msk.mxu0 %vm283_vm0, %v270_v0  ;;  %784 = vmatpush3.msra.mxu1 %v367_v3  ;;  %v364_v6 = vld [vmem:[%s1169_s2] sm:$0xff]  ;;  %v460_v14 = vld [vmem:[%s1170_s3 + $0x18] sm:$0xff]  ;;  %v459_v15 = vld [vmem:[%s1170_s3 + $0x10] sm:$0xff]  ;;  %s258_s16 = sand.u32 1, %s952_s22   ;;  %s756_s28 = sshll.u32 %s1024_s25, 8 }
  0x27   : > { %s1183_s17 = smov (!%p262_p8, %s736_s17), 7  ;;  %779 = vmatpush3.msk.msra.mxu0 %vm283_vm0, %v270_v0  ;;  %785 = vmatprep.subr.mxu1 %v366_v4  ;;  %v738_v7 = vld [vmem:[%s1172_s5] ss:$0 sm:$0xff]  ;;  %v458_v16 = vld [vmem:[%s1170_s3 + $0x8] sm:$0xff]  ;;  %v742_v18 = vld [vmem:[%s1172_s5 + $0x1] ss:$0 sm:$0xff]  ;;  %s1125_s10 = scalar_lea.hbm %s1173_s6, %s756_s28 }
  0x28   : > { %s737_s18 = sshll.u32 %s1183_s17, 3  ;;  %786 = vmatpush3.msra.mxu1 %v366_v4  ;;  %794 = vmatprep.subr.mxu0 %v460_v14  ;;  %v457_v17 = vld [vmem:[%s1170_s3] sm:$0xff]  ;;  %v552_v25 = vld [vmem:[#allocation2 + $0x18] sm:$0xff]  ;;  %v551_v26 = vld [vmem:[#allocation2 + $0x10] sm:$0xff]  ;;  %s735_s17 = sshll.u32 %s258_s16, 4 }
  0x29   : > { %s265_s26 = scalar_lea.vmem %s1167_s0, %s737_s18  ;;  %787 = vmatprep.subr.mxu1 %v365_v5  ;;  %v550_v27 = vld [vmem:[#allocation2 + $0x8] sm:$0xff]  ;;  %v549_v28 = vld [vmem:[#allocation2] sm:$0xff]  ;;  %s260_s20 = scalar_lea.vmem [#allocation5], %s735_s17 }
  0x2a   : > { %v268_v1 = vld [vmem:[%s265_s26] sm:$0xff]  ;;  %v269_v2 = vld [vmem:[%s265_s26 + $0x8] sm:$0xff]  ;;  %788 = vmatpush3.msra.mxu1 %v365_v5  ;;  %s655_s26 = sshll.u32 %s260_s20, 4  ;;  %s1127_s11 = scalar_lea.sflag [#allocation4], %s258_s16  ;;  %s1120_s26 = int_to_ptr.vmem [resolvable:$true] %s655_s26 }
  0x2b   : > { %780 = vmatprep.mubr.msk.f32.mxu0 %vm276_vm1, %v268_v1  ;;  %789 = vmatprep.subr.mxu1 %v364_v6  ;;  %v745_v29 = vld [vmem:[%s1172_s5 + $0x2] ss:$0 sm:$0xff]  ;;  %v748_v36 = vld [vmem:[%s1172_s5 + $0x3] ss:$0 sm:$0xff]  ;;  %s896_s12 = scalar_lea.vmem %s1120_s26, 256  ;;  %s965_s25 = smov [#allocation5]  }
  0x2c   : > { %781 = vmatmul.mubr.msk.f32.vlgmr.msra.gmra.mxu0 %vm276_vm1, %v269_v2  ;;  %790 = vmatpush3.msra.mxu1 %v364_v6  ;;  %p897_p6 = scmp.ne.s32.totalorder %s1120_s26, %s896_s12  ;;  %s900_s13 = sshll.u32 %s965_s25, 4  ;;  %s901_s13 = int_to_ptr.vmem [resolvable:$false] %s900_s13 }
  0x2d   : > { %795 = vmatpush3.msra.mxu0 %v460_v14  ;;  %805 = vmatprep.subr.mxu1 %v552_v25  ;;  %s902_s14 = scalar_lea.vmem %s901_s13, 512  ;;  %p903_p11 = scmp.lt.s32.totalorder %s1120_s26, %s901_s13 }
  0x2e   : > { %796 = vmatprep.subr.mxu0 %v459_v15  ;;  %p898_p9 = pnand %p897_p6, %p1041_p5  ;;  %p904_p12 = scmp.lt.s32.totalorder %s902_s14, %s896_s12 }
  0x2f   : > { %797 = vmatpush3.msra.mxu0 %v459_v15 }
  0x30   : > { %798 = vmatprep.subr.mxu0 %v458_v16  ;;  %p899_p10 = pneg %p898_p9  ;;  %p905_p13 = por %p904_p12, %p903_p11 }
  0x31   : > { %799 = vmatpush3.msra.mxu0 %v458_v16 }
  0x32   : > { %800 = vmatprep.subr.mxu0 %v457_v17  ;;  %p906_p0 = pnand %p905_p13, %p899_p10 }
  0x33   : > { %801 = vmatpush3.msra.mxu0 %v457_v17 }
  0xec   : > { %v782_v8 = vpop.f32.mrf.mxu0 }
  0xed   : > { %v359_v9 = vadd.f32 %v782_v8, %v738_v7 }
  0xee   : > { %v353_v10 = vpop.f32.mrf.mxu0 }
  0xef   : > { %v354_v11 = vadd.f32 %v738_v7, %v353_v10  ;;  %v363_v13 = vmax.f32 %v359_v9, 0.0 }
  0xf1   : > { %v362_v12 = vmax.f32 %v354_v11, 0.0 }
  0xf3   : > { %791 = vmatprep.mubr.msk.f32.mxu1 %vm373_vm2, %v362_v12 }
  0xf4   : > { %792 = vmatmul.mubr.msk.f32.vlgmr.msra.gmra.mxu1 %vm373_vm2, %v363_v13 }
  0xf5   : > { %806 = vmatpush3.msra.mxu1 %v552_v25 }
  0xf6   : > { %807 = vmatprep.subr.mxu1 %v551_v26 }
  0xf7   : > { %808 = vmatpush3.msra.mxu1 %v551_v26 }
  0xf8   : > { %809 = vmatprep.subr.mxu1 %v550_v27 }
  0xf9   : > { %810 = vmatpush3.msra.mxu1 %v550_v27 }
  0xfa   : > { %811 = vmatprep.subr.mxu1 %v549_v28 }
  0xfb   : > { %812 = vmatpush3.msra.mxu1 %v549_v28 }
 0x1b4   : > { %v793_v19 = vpop.f32.mrf.mxu1 }
 0x1b5   : > { %v452_v20 = vadd.f32 %v793_v19, %v742_v18 }
 0x1b6   : > { %v446_v21 = vpop.f32.mrf.mxu1 }
 0x1b7   : > { %v447_v22 = vadd.f32 %v742_v18, %v446_v21  ;;  %v456_v24 = vmax.f32 %v452_v20, 0.0 }
 0x1b9   : > { %v455_v23 = vmax.f32 %v447_v22, 0.0 }
 0x1bb   : > { %802 = vmatprep.mubr.msk.f32.mxu0 %vm373_vm2, %v455_v23 }
 0x1bc   : > { %803 = vmatmul.mubr.msk.f32.vlgmr.msra.gmra.mxu0 %vm373_vm2, %v456_v24 }
 0x27c   : > { %v804_v30 = vpop.f32.mrf.mxu0 }
 0x27d   : > { %v544_v31 = vadd.f32 %v804_v30, %v745_v29 }
 0x27e   : > { %v538_v32 = vpop.f32.mrf.mxu0 }
 0x27f   : > { %v539_v33 = vadd.f32 %v745_v29, %v538_v32  ;;  %v548_v35 = vmax.f32 %v544_v31, 0.0 }
 0x281   : > { %v547_v34 = vmax.f32 %v539_v33, 0.0 }
 0x283   : > { %813 = vmatprep.mubr.msk.f32.mxu1 %vm373_vm2, %v547_v34 }
 0x284   : > { %814 = vmatmul.mubr.msk.f32.vlgmr.msra.gmra.mxu1 %vm373_vm2, %v548_v35 }
 0x344   : > { %v815_v37 = vpop.f32.mrf.mxu1 }
 0x345   : > { %v636_v38 = vadd.f32 %v815_v37, %v748_v36 }
 0x346   : > { %v630_v39 = vpop.f32.mrf.mxu1 }
 0x347   : > { %640 = vst [vmem:[%s260_s20 + $0x8] sm:$0xff] %v636_v38  ;;  %v631_v40 = vadd.f32 %v748_v36, %v630_v39 }
 0x349   : > { %639 = vst [vmem:[%s260_s20] sm:$0xff] %v631_v40 }
 0x34a   : > { %909 = shalt.err (!%p906_p0)
}
 0x34b   : > { %s910_s15 = scalar_lea.hbm %s1125_s10, 256  ;;  %s914_s18 = scalar_lea.hbm %s1173_s6, 1024 }
 0x34c   : > { %p911_p1 = scmp.ne.s32.totalorder %s1125_s10, %s910_s15  ;;  %p915_p4 = scmp.lt.s32.totalorder %s1125_s10, %s1173_s6 }
 0x34d   : > { %p916_p7 = scmp.lt.s32.totalorder %s914_s18, %s910_s15 }
 0x34e   : > { %p912_p2 = pnand %p911_p1, %p1041_p5 }
 0x34f   : > { %p917_p8 = por %p916_p7, %p915_p4 }
 0x350   : > { %p913_p3 = pneg %p912_p2 }
 0x352   : > { %p918_p6 = pnand %p917_p8, %p913_p3 }
 0x354   : > { %921 = shalt.err (!%p918_p6)
}
 0x355   : > { %s966_s28 = smov 128   ;;  %s967_s29 = smov 8  }
 0x356   : > { %820 = dma.vmem_to_hbm [thread:$0]  (%p1041_p5), %s1120_s26, 256, %s1125_s10, %s1127_s11, %s966_s28, %s966_s28, %s967_s29  }
 0x357 PF: > { %p832_p9 = scmp.ge.s32.totalorder %s960_s24, 2  ;;  %s670_s9 = sand.u32 1, %s948_s21  }
 0x358   : > { %p1177_p10 = scmp.ne.s32.totalorder %s1175_s8, 0  ;;  %s671_s12 = scalar_lea.sflag [#allocation4], %s670_s9 }
 0x35a   : > { %p827_p11 = pnand %p832_p9, %p1177_p10 }
 0x35c   : > { %p828_p12 = pneg %p827_p11 }
 0x35e   : > { %943 = dma.done.wait (%p828_p12), %s671_s12, 256  }
 0x35f   : > { %945 = vsyncadd (%p828_p12), %s671_s12, 4294967040  ;;  %p17_p13 = scmp.ge.s32.totalorder %s1028_s27, 6   ;;  %s1178_s21 = smov %s952_s22 }
 0x360   : > { %s1179_s22 = smov %s956_s23  ;;  %s1180_s23 = smov %s1039_s30 }
 0x361   : > { %s1181_s24 = smov %s1028_s27  ;;  %19 = sbr.rel (!%p17_p13) target bundleno = 4 (0x4), region = 84 }
 0x366   :  { %676 = vsyncpa [#allocation3], 1 }
 0x367   :  { %678 = vsyncpa [#allocation3 + $0x1], 1 }
 0x368   :  { %679 = vsyncpa [#allocation4], 1 }
 0x369   :  { %681 = vsyncpa [#allocation4 + $0x1], 1 }

</bundles_post_ra>
